<compile_context>
chip_gen: v6e
topology: v6e:2x2x1
jax: 0.10.0
libtpu: 0.0.40
codegen_flags: <defaults>
</compile_context>

<pallas_src>
import functools

import jax
import jax.numpy as jnp
from jax import lax
from jax.experimental import pallas as pl
from jax.experimental.pallas import tpu as pltpu


def _make_kernel(K, TH, W, KC, nE):
    """Kernel: K shifted matmul-accumulates, fused over all scales/taps-in-W."""
    rows = TH * W

    def kernel(x_ref, w_ref, b_ref, o_ref, acc_ref):
        # x_ref:   ((TH+2P)*W, K*C)   H-haloed, kj-folded image tile
        # w_ref:   (K, K*C, n_scale*E) fused per-row-tap projection weights
        # b_ref:   (1, n_scale*E)      concatenated biases (f32)
        # o_ref:   (TH*W, n_scale*E)   output tile
        # acc_ref: (TH*W, n_scale*E)   f32 accumulator scratch

        # Fold the bias into the accumulator init (no per-scale "+ b" later).
        acc_ref[...] = jnp.broadcast_to(b_ref[...], (rows, nE))

        # For output pixel j (= h*W + w) and vertical tap ki, the source row in
        # the H-haloed flattened tile is j + ki*W (static offset).  The kj taps
        # were pre-folded into the K*C channel axis by the wrapper.
        for ki in range(K):
            xs = x_ref[pl.ds(ki * W, rows), :]            # (TH*W, K*C)
            acc_ref[...] += jnp.dot(
                xs, w_ref[ki], preferred_element_type=jnp.float32)

        # Single contiguous full-width store of the fused multi-scale tile.
        o_ref[...] = acc_ref[...].astype(o_ref.dtype)

    return kernel


def _pick_tile_h(H, W, KC, nE, P, in_bpe, out_bpe, budget_bytes=6 << 20):
    """Largest divisor of H whose double-buffered tile footprint fits budget."""
    candidates = []
    for th in range(1, H + 1):
        if H % th:
            continue
        if (th * W) % 8 != 0 and th != H:
            continue
        l2 = (th + 2 * P) * W
        tot = (2 * l2 * KC * in_bpe            # double-buffered input tile
               + 2 * th * W * nE * out_bpe     # double-buffered output tile
               + th * W * nE * 4)              # f32 accumulator (single)
        if tot <= budget_bytes:
            candidates.append(th)
    return max(candidates) if candidates else H


@functools.partial(
    jax.jit,
    static_argnames=("n_scale", "embed_dim", "tile_h", "compute_dtype"))
def ms_patch_embed(x_nchw, weights, biases, *, n_scale, embed_dim,
                   tile_h=None, compute_dtype=None):
    """Pallas implementation of MSPatchEmbed.forward (norm_layer=None).

    x_nchw:  (B, C, H, W)
    weights: list of conv weights, weights[s] has shape (E, C, k_s, k_s)
    biases:  list of conv biases,  biases[s] has shape (E,)
    returns: (B, H*W, n_scale * E)
    """
    B, C, H, W = x_nchw.shape
    E = embed_dim
    nE = n_scale * E
    ksizes = [int(w.shape[-1]) for w in weights]
    K = max(ksizes)
    P = K // 2
    KC = K * C
    cdtype = (jnp.dtype(x_nchw.dtype) if compute_dtype is None
              else jnp.dtype(compute_dtype))
    out_dtype = x_nchw.dtype

    if tile_h is None:
        TH = _pick_tile_h(H, W, KC, nE, P,
                          jnp.dtype(cdtype).itemsize,
                          jnp.dtype(out_dtype).itemsize)
    else:
        TH = int(tile_h)
    assert H % TH == 0, f"tile_h={TH} must divide H={H}"
    assert (TH * W) % 8 == 0 or TH == H, "tile rows must be a multiple of 8"
    nH = H // TH
    L2 = (TH + 2 * P) * W

    # --- Stage inputs: kj taps folded into channels, H halo per tile ---------
    # Total staged bytes ~ K * (1 + 2P/TH) * raw image — far below the K^2 *
    # (1 + 9 + 25)x blow-up of a full HBM im2col, and below the output size.
    x_nhwc = jnp.transpose(x_nchw, (0, 2, 3, 1)).astype(cdtype)       # (B,H,W,C)
    xw = jnp.pad(x_nhwc, ((0, 0), (0, 0), (P, P), (0, 0)))            # pad W
    # (B, H, W, K*C): channel block kj holds the image shifted by (kj - P) in W
    # (real zeros outside the border -> no in-kernel masks needed).
    x_shift = jnp.concatenate([xw[:, :, kj:kj + W, :] for kj in range(K)],
                              axis=-1)
    xh = jnp.pad(x_shift, ((0, 0), (P, P), (0, 0), (0, 0)))           # pad H
    xf = xh.reshape(B, (H + 2 * P) * W, KC)
    # Per-H-tile flattened slabs with vertical halo: (B, nH, L2, K*C)
    x_tiles = jnp.stack(
        [xf[:, i * TH * W: i * TH * W + L2, :] for i in range(nH)], axis=1)

    # --- Fused multi-scale weights: (K, K*C, n_scale*E), zero-padded taps ----
    w_comb = jnp.zeros((K, K, C, nE), dtype=cdtype)
    for s in range(n_scale):
        k_s = ksizes[s]
        off = P - k_s // 2
        # (E, C, k, k) -> (k, k, C, E), matching the (ki, kj) tap order above.
        w_s = jnp.transpose(weights[s], (2, 3, 1, 0)).astype(cdtype)
        w_comb = w_comb.at[off:off + k_s, off:off + k_s, :,
                           s * E:(s + 1) * E].set(w_s)
    w_comb = w_comb.reshape(K, KC, nE)          # [ki, kj*C + c, s*E + e]
    # Concatenated biases, kept in f32 for accumulator init.
    b_comb = jnp.concatenate(
        [b.reshape(1, E).astype(jnp.float32) for b in biases], axis=-1)

    kernel = _make_kernel(K, TH, W, KC, nE)

    return pl.pallas_call(
        kernel,
        out_shape=jax.ShapeDtypeStruct((B, H * W, nE), out_dtype),
        grid_spec=pltpu.PrefetchScalarGridSpec(
            num_scalar_prefetch=0,
            grid=(B, nH),
            in_specs=[
                # Image tile with halo; leading (b, tile) dims squeezed out.
                pl.BlockSpec((None, None, L2, KC), lambda b, i: (b, i, 0, 0)),
                # Fused weights / biases: constant blocks -> fetched once.
                pl.BlockSpec((K, KC, nE), lambda b, i: (0, 0, 0)),
                pl.BlockSpec((1, nE), lambda b, i: (0, 0)),
            ],
            out_specs=pl.BlockSpec((None, TH * W, nE), lambda b, i: (b, i, 0)),
            scratch_shapes=[pltpu.VMEM((TH * W, nE), jnp.float32)],
        ),
        compiler_params=pltpu.CompilerParams(
            dimension_semantics=("parallel", "parallel"),
            vmem_limit_bytes=32 * 1024 * 1024,
        ),
    )(x_tiles, w_comb, b_comb)


def _reference(x_nchw, weights, biases, n_scale):
    """Pure-JAX reference mirroring the PyTorch forward (NCHW convs)."""
    outs = []
    for s in range(n_scale):
        k = weights[s].shape[-1]
        pad = k // 2
        y = lax.conv_general_dilated(
            x_nchw, weights[s],
            window_strides=(1, 1),
            padding=((pad, pad), (pad, pad)),
            dimension_numbers=("NCHW", "OIHW", "NCHW"),
        ) + biases[s][None, :, None, None]
        B, E, H, W = y.shape
        outs.append(jnp.transpose(y.reshape(B, E, H * W), (0, 2, 1)))
    return jnp.concatenate(outs, axis=-1)


if __name__ == "__main__":
    # Small config consistent with the module: batch=2, in_chans=4, 16x16 image,
    # embed_dim=8, n_scale=3 (kernel sizes 1, 3, 5).
    B, C, H, W = 2, 4, 16, 16
    embed_dim = 8
    n_scale = 3
    kernel_sizes = [1, 3, 5]

    key = jax.random.PRNGKey(0)
    kx, *kparams = jax.random.split(key, 1 + 2 * n_scale)
    x = jax.random.normal(kx, (B, C, H, W), dtype=jnp.float32)

    weights = []
    biases = []
    for s in range(n_scale):
        k = kernel_sizes[s]
        weights.append(0.1 * jax.random.normal(kparams[2 * s],
                                               (embed_dim, C, k, k),
                                               dtype=jnp.float32))
        biases.append(0.1 * jax.random.normal(kparams[2 * s + 1],
                                              (embed_dim,),
                                              dtype=jnp.float32))

    # tile_h=8 exercises the H-tiling grid axis (nH=2) and the halo logic.
    out = ms_patch_embed(x, weights, biases,
                         n_scale=n_scale, embed_dim=embed_dim, tile_h=8)
    out = jax.block_until_ready(out)

    ref = jax.block_until_ready(_reference(x, weights, biases, n_scale))
    assert out.shape == (B, H * W, n_scale * embed_dim), out.shape
    assert jnp.allclose(out, ref, atol=1e-4, rtol=1e-4)

    print("KERNEL_OK")
</pallas_src>

<mosaic_0001>
module attributes {stable_mosaic.version = 11 : i64} {
  func.func @kernel(%arg0: i32, %arg1: i32, %arg2: memref<1x1x192x20xf32, #tpu.memory_space<vmem>>, %arg3: memref<5x20x24xf32, #tpu.memory_space<vmem>>, %arg4: memref<1x24xf32, #tpu.memory_space<vmem>>, %arg5: memref<1x128x24xf32, #tpu.memory_space<vmem>>, %arg6: memref<128x24xf32, #tpu.memory_space<vmem>>) attributes {dimension_semantics = [#tpu.dimension_semantics<parallel>, #tpu.dimension_semantics<parallel>], iteration_bounds = array<i64: 2, 2>, scalar_prefetch = 0 : i64, scratch_operands = 1 : i64, tpu.core_type = #tpu.core_type<tc>, window_params = [{transform_indices = @transform_0, window_bounds = array<i64: 1, 1, 192, 20>}, {pipeline_mode = #tpu.pipeline_mode<synchronous>, transform_indices = @transform_1, window_bounds = array<i64: 5, 20, 24>}, {pipeline_mode = #tpu.pipeline_mode<synchronous>, transform_indices = @transform_2, window_bounds = array<i64: 1, 24>}, {transform_indices = @transform_3, window_bounds = array<i64: 1, 128, 24>}]} {
    %c0 = arith.constant 0 : index
    %c0_0 = arith.constant 0 : index
    %0 = vector.load %arg4[%c0, %c0_0] : memref<1x24xf32, #tpu.memory_space<vmem>>, vector<1x24xf32>
    %1 = vector.shape_cast %0 : vector<1x24xf32> to vector<1x24xf32>
    %2 = vector.broadcast %1 : vector<1x24xf32> to vector<128x24xf32>
    %c0_1 = arith.constant 0 : index
    %c0_2 = arith.constant 0 : index
    %3 = vector.load %arg6[%c0_1, %c0_2] : memref<128x24xf32, #tpu.memory_space<vmem>>, vector<128x24xf32>
    tpu.vector_store %arg6[%c0_1, %c0_2], %2 {strides = array<i32>} : memref<128x24xf32, #tpu.memory_space<vmem>>, vector<128x24xf32>,
    %c0_3 = arith.constant 0 : index
    %c0_4 = arith.constant 0 : index
    %c0_5 = arith.constant 0 : index
    %c0_6 = arith.constant 0 : index
    %4 = vector.load %arg2[%c0_3, %c0_4, %c0_5, %c0_6] : memref<1x1x192x20xf32, #tpu.memory_space<vmem>>, vector<1x1x128x20xf32>
    %5 = vector.shape_cast %4 : vector<1x1x128x20xf32> to vector<128x20xf32>
    %c0_7 = arith.constant 0 : index
    %c0_8 = arith.constant 0 : index
    %6 = vector.load %arg6[%c0_7, %c0_8] : memref<128x24xf32, #tpu.memory_space<vmem>>, vector<128x24xf32>
    %c0_9 = arith.constant 0 : index
    %c0_10 = arith.constant 0 : index
    %c0_11 = arith.constant 0 : index
    %7 = vector.load %arg3[%c0_9, %c0_10, %c0_11] : memref<5x20x24xf32, #tpu.memory_space<vmem>>, vector<1x20x24xf32>
    %8 = vector.shape_cast %7 : vector<1x20x24xf32> to vector<20x24xf32>
    %cst = arith.constant dense<0.000000e+00> : vector<128x24xf32>
    %9 = tpu.matmul %5, %8, %cst {dimension_numbers = #tpu.dot_dimension_numbers<[1], [0], [0], [1], [0, 0, 1, 1], [], []>} : vector<128x20xf32>, vector<20x24xf32>, vector<128x24xf32> -> vector<128x24xf32>
    %10 = arith.addf %6, %9 : vector<128x24xf32>
    %c0_12 = arith.constant 0 : index
    %c0_13 = arith.constant 0 : index
    %11 = vector.load %arg6[%c0_12, %c0_13] : memref<128x24xf32, #tpu.memory_space<vmem>>, vector<128x24xf32>
    tpu.vector_store %arg6[%c0_12, %c0_13], %10 {strides = array<i32>} : memref<128x24xf32, #tpu.memory_space<vmem>>, vector<128x24xf32>,
    %c0_14 = arith.constant 0 : index
    %c0_15 = arith.constant 0 : index
    %c16 = arith.constant 16 : index
    %c0_16 = arith.constant 0 : index
    %12 = vector.load %arg2[%c0_14, %c0_15, %c16, %c0_16] : memref<1x1x192x20xf32, #tpu.memory_space<vmem>>, vector<1x1x128x20xf32>
    %13 = vector.shape_cast %12 : vector<1x1x128x20xf32> to vector<128x20xf32>
    %c0_17 = arith.constant 0 : index
    %c0_18 = arith.constant 0 : index
    %14 = vector.load %arg6[%c0_17, %c0_18] : memref<128x24xf32, #tpu.memory_space<vmem>>, vector<128x24xf32>
    %c1 = arith.constant 1 : index
    %c0_19 = arith.constant 0 : index
    %c0_20 = arith.constant 0 : index
    %15 = vector.load %arg3[%c1, %c0_19, %c0_20] : memref<5x20x24xf32, #tpu.memory_space<vmem>>, vector<1x20x24xf32>
    %16 = vector.shape_cast %15 : vector<1x20x24xf32> to vector<20x24xf32>
    %cst_21 = arith.constant dense<0.000000e+00> : vector<128x24xf32>
    %17 = tpu.matmul %13, %16, %cst_21 {dimension_numbers = #tpu.dot_dimension_numbers<[1], [0], [0], [1], [0, 0, 1, 1], [], []>} : vector<128x20xf32>, vector<20x24xf32>, vector<128x24xf32> -> vector<128x24xf32>
    %18 = arith.addf %14, %17 : vector<128x24xf32>
    %c0_22 = arith.constant 0 : index
    %c0_23 = arith.constant 0 : index
    %19 = vector.load %arg6[%c0_22, %c0_23] : memref<128x24xf32, #tpu.memory_space<vmem>>, vector<128x24xf32>
    tpu.vector_store %arg6[%c0_22, %c0_23], %18 {strides = array<i32>} : memref<128x24xf32, #tpu.memory_space<vmem>>, vector<128x24xf32>,
    %c0_24 = arith.constant 0 : index
    %c0_25 = arith.constant 0 : index
    %c32 = arith.constant 32 : index
    %c0_26 = arith.constant 0 : index
    %20 = vector.load %arg2[%c0_24, %c0_25, %c32, %c0_26] : memref<1x1x192x20xf32, #tpu.memory_space<vmem>>, vector<1x1x128x20xf32>
    %21 = vector.shape_cast %20 : vector<1x1x128x20xf32> to vector<128x20xf32>
    %c0_27 = arith.constant 0 : index
    %c0_28 = arith.constant 0 : index
    %22 = vector.load %arg6[%c0_27, %c0_28] : memref<128x24xf32, #tpu.memory_space<vmem>>, vector<128x24xf32>
    %c2 = arith.constant 2 : index
    %c0_29 = arith.constant 0 : index
    %c0_30 = arith.constant 0 : index
    %23 = vector.load %arg3[%c2, %c0_29, %c0_30] : memref<5x20x24xf32, #tpu.memory_space<vmem>>, vector<1x20x24xf32>
    %24 = vector.shape_cast %23 : vector<1x20x24xf32> to vector<20x24xf32>
    %cst_31 = arith.constant dense<0.000000e+00> : vector<128x24xf32>
    %25 = tpu.matmul %21, %24, %cst_31 {dimension_numbers = #tpu.dot_dimension_numbers<[1], [0], [0], [1], [0, 0, 1, 1], [], []>} : vector<128x20xf32>, vector<20x24xf32>, vector<128x24xf32> -> vector<128x24xf32>
    %26 = arith.addf %22, %25 : vector<128x24xf32>
    %c0_32 = arith.constant 0 : index
    %c0_33 = arith.constant 0 : index
    %27 = vector.load %arg6[%c0_32, %c0_33] : memref<128x24xf32, #tpu.memory_space<vmem>>, vector<128x24xf32>
    tpu.vector_store %arg6[%c0_32, %c0_33], %26 {strides = array<i32>} : memref<128x24xf32, #tpu.memory_space<vmem>>, vector<128x24xf32>,
    %c0_34 = arith.constant 0 : index
    %c0_35 = arith.constant 0 : index
    %c48 = arith.constant 48 : index
    %c0_36 = arith.constant 0 : index
    %28 = vector.load %arg2[%c0_34, %c0_35, %c48, %c0_36] : memref<1x1x192x20xf32, #tpu.memory_space<vmem>>, vector<1x1x128x20xf32>
    %29 = vector.shape_cast %28 : vector<1x1x128x20xf32> to vector<128x20xf32>
    %c0_37 = arith.constant 0 : index
    %c0_38 = arith.constant 0 : index
    %30 = vector.load %arg6[%c0_37, %c0_38] : memref<128x24xf32, #tpu.memory_space<vmem>>, vector<128x24xf32>
    %c3 = arith.constant 3 : index
    %c0_39 = arith.constant 0 : index
    %c0_40 = arith.constant 0 : index
    %31 = vector.load %arg3[%c3, %c0_39, %c0_40] : memref<5x20x24xf32, #tpu.memory_space<vmem>>, vector<1x20x24xf32>
    %32 = vector.shape_cast %31 : vector<1x20x24xf32> to vector<20x24xf32>
    %cst_41 = arith.constant dense<0.000000e+00> : vector<128x24xf32>
    %33 = tpu.matmul %29, %32, %cst_41 {dimension_numbers = #tpu.dot_dimension_numbers<[1], [0], [0], [1], [0, 0, 1, 1], [], []>} : vector<128x20xf32>, vector<20x24xf32>, vector<128x24xf32> -> vector<128x24xf32>
    %34 = arith.addf %30, %33 : vector<128x24xf32>
    %c0_42 = arith.constant 0 : index
    %c0_43 = arith.constant 0 : index
    %35 = vector.load %arg6[%c0_42, %c0_43] : memref<128x24xf32, #tpu.memory_space<vmem>>, vector<128x24xf32>
    tpu.vector_store %arg6[%c0_42, %c0_43], %34 {strides = array<i32>} : memref<128x24xf32, #tpu.memory_space<vmem>>, vector<128x24xf32>,
    %c0_44 = arith.constant 0 : index
    %c0_45 = arith.constant 0 : index
    %c64 = arith.constant 64 : index
    %c0_46 = arith.constant 0 : index
    %36 = vector.load %arg2[%c0_44, %c0_45, %c64, %c0_46] : memref<1x1x192x20xf32, #tpu.memory_space<vmem>>, vector<1x1x128x20xf32>
    %37 = vector.shape_cast %36 : vector<1x1x128x20xf32> to vector<128x20xf32>
    %c0_47 = arith.constant 0 : index
    %c0_48 = arith.constant 0 : index
    %38 = vector.load %arg6[%c0_47, %c0_48] : memref<128x24xf32, #tpu.memory_space<vmem>>, vector<128x24xf32>
    %c4 = arith.constant 4 : index
    %c0_49 = arith.constant 0 : index
    %c0_50 = arith.constant 0 : index
    %39 = vector.load %arg3[%c4, %c0_49, %c0_50] : memref<5x20x24xf32, #tpu.memory_space<vmem>>, vector<1x20x24xf32>
    %40 = vector.shape_cast %39 : vector<1x20x24xf32> to vector<20x24xf32>
    %cst_51 = arith.constant dense<0.000000e+00> : vector<128x24xf32>
    %41 = tpu.matmul %37, %40, %cst_51 {dimension_numbers = #tpu.dot_dimension_numbers<[1], [0], [0], [1], [0, 0, 1, 1], [], []>} : vector<128x20xf32>, vector<20x24xf32>, vector<128x24xf32> -> vector<128x24xf32>
    %42 = arith.addf %38, %41 : vector<128x24xf32>
    %c0_52 = arith.constant 0 : index
    %c0_53 = arith.constant 0 : index
    %43 = vector.load %arg6[%c0_52, %c0_53] : memref<128x24xf32, #tpu.memory_space<vmem>>, vector<128x24xf32>
    tpu.vector_store %arg6[%c0_52, %c0_53], %42 {strides = array<i32>} : memref<128x24xf32, #tpu.memory_space<vmem>>, vector<128x24xf32>,
    %c0_54 = arith.constant 0 : index
    %c0_55 = arith.constant 0 : index
    %44 = vector.load %arg6[%c0_54, %c0_55] : memref<128x24xf32, #tpu.memory_space<vmem>>, vector<128x24xf32>
    %c0_56 = arith.constant 0 : index
    %c0_57 = arith.constant 0 : index
    %c0_58 = arith.constant 0 : index
    %45 = vector.load %arg5[%c0_56, %c0_57, %c0_58] : memref<1x128x24xf32, #tpu.memory_space<vmem>>, vector<1x128x24xf32>
    %46 = vector.shape_cast %45 : vector<1x128x24xf32> to vector<128x24xf32>
    %47 = vector.shape_cast %44 : vector<128x24xf32> to vector<1x128x24xf32>
    tpu.vector_store %arg5[%c0_56, %c0_57, %c0_58], %47 {strides = array<i32>} : memref<1x128x24xf32, #tpu.memory_space<vmem>>, vector<1x128x24xf32>,
    return
  }
  func.func @transform_0(%arg0: i32, %arg1: i32) -> (i32, i32, i32, i32) {
    %c0_i32 = arith.constant 0 : i32
    %c0_i32_0 = arith.constant 0 : i32
    %c0_i32_1 = arith.constant 0 : i32
    return %arg0, %arg1, %c0_i32, %c0_i32_0 : i32, i32, i32, i32
  }
  func.func @transform_1(%arg0: i32, %arg1: i32) -> (i32, i32, i32) {
    %c0_i32 = arith.constant 0 : i32
    %c0_i32_0 = arith.constant 0 : i32
    %c0_i32_1 = arith.constant 0 : i32
    %c0_i32_2 = arith.constant 0 : i32
    return %c0_i32, %c0_i32_0, %c0_i32_1 : i32, i32, i32
  }
  func.func @transform_2(%arg0: i32, %arg1: i32) -> (i32, i32) {
    %c0_i32 = arith.constant 0 : i32
    %c0_i32_0 = arith.constant 0 : i32
    %c0_i32_1 = arith.constant 0 : i32
    return %c0_i32, %c0_i32_0 : i32, i32
  }
  func.func @transform_3(%arg0: i32, %arg1: i32) -> (i32, i32, i32) {
    %c0_i32 = arith.constant 0 : i32
    %c0_i32_0 = arith.constant 0 : i32
    return %arg0, %arg1, %c0_i32 : i32, i32, i32
  }
}

</mosaic_0001>

<bundles_post_ra>
// kernel: ms_patch_embed.1
= control target key start
LH: loop header
LB: loop body
LE: loop exit
PB: predicated region body
PF: predicated region fallthrough
CT: control target
= control target key end

     0   :  { %s2140_s12 = smov 0   ;;  %s2142_s13 = smov 0   ;;  %s2561_s0 = inlined_call_operand.vmem [shape: f32[2,2,192,20], index: 0, kind: input, shape index: {}]   ;;  %s2562_s1 = inlined_call_operand.vmem [shape: f32[5,20,24], index: 1, kind: input, shape index: {}]   ;;  %s2563_s2 = inlined_call_operand.vmem [shape: f32[1,24], index: 2, kind: input, shape index: {}]   ;;  %s2564_s3 = inlined_call_operand.vmem [shape: f32[2,256,24], index: 3, kind: output, shape index: {}]  }
   0x1   :  { %s2144_s14 = smov 0   ;;  %s2146_s15 = smov 0  }
   0x2   :  { %s2148_s16 = smov 0  }
   0x3 LB: > { %s22_s17 = sadd.s32 1, %s2110_s14  ;;  %s25_s18 = sadd.s32 1, %s2114_s15  ;;  %s2118_s16 = sphi %s2148_s16, %s13_s16   ;;  %s2114_s15 = sphi %s2146_s15, %s2569_s15   ;;  %s2110_s14 = sphi %s2144_s14, %s2568_s14   ;;  %s2106_s13 = sphi %s2142_s13, %s2567_s13   ;;  %s2102_s12 = sphi %s2140_s12, %s2566_s12  }
   0x4   : > { %p23_p0 = scmp.ge.s32.totalorder %s22_s17, 2  ;;  %p1682_p1 = scmp.ge.s32.totalorder %s2118_s16, 1 }
   0x5   : > { %p157_p2 = scmp.lt.s32.totalorder %s2118_s16, 5 }
   0x6   : > { %s2571_s17 = smov (%p23_p0, %s22_s17), 0  ;;  %s2573_s18 = smov (!%p23_p0, %s25_s18), %s2114_s15 }
   0x7   : > { %p158_p3 = pnand %p1682_p1, %p157_p2  ;;  %p27_p4 = scmp.ge.s32.totalorder %s2573_s18, 2 }
   0x8   : > { %p189_p5 = scmp.lt.s32.totalorder (!%p158_p3), %s2106_s13, 1  ;;  %p191_p6 = scmp.lt.s32.totalorder (!%p158_p3), %s2102_s12, 1 }
   0x9   : > { %s2575_s18 = smov (%p27_p4, %s2573_s18), 0  ;;  %161 = sbr.rel (%p158_p3) target bundleno = 316 (0x13c), region = 32 }
   0xe   : > { %v266_v0 = vld [vmem:[%s2562_s1 + $0x10] sm:$0xf]  ;;  %vm316_vm0 = vcmask 1043456   ;;  %v265_v1 = vld [vmem:[%s2562_s1 + $0x8] sm:$0xff]  ;;  %v264_v2 = vld [vmem:[%s2562_s1] sm:$0xff]  ;;  %s2577_s13 = smov (!%p189_p5, %s2106_s13), 1 }
   0xf   : > { %2032 = vmatprep.subr.msk.mxu1 %vm316_vm0, %v266_v0  ;;  %1882 = vmatprep.subr.msk.mxu0 %vm316_vm0, %v266_v0  ;;  %s2189_s25 = scalar_select %p191_p6, %s2102_s12, 1  ;;  %vm215_vm1 = vcmask 195584   ;;  %v1707_v3 = vld [vmem:[%s2562_s1 + $0x28] sm:$0xf]  ;;  %v1727_v4 = vld [vmem:[%s2562_s1 + $0x40] sm:$0xf] }
  0x10   : > { %2035 = vmatpush3.msk.msra.mxu1 %vm316_vm0, %v266_v0  ;;  %1883 = vmatpush3.msk.msra.mxu0 %vm316_vm0, %v266_v0  ;;  %s2039_s26 = smul.u32 48, %s2577_s13  ;;  %v1687_v5 = vld [vmem:[%s2563_s2] ss:$0 sm:$0xff]  ;;  %vm267_vm2 = vcmask 162816   ;;  %v1705_v14 = vld [vmem:[%s2562_s1 + $0x18] sm:$0xff]  ;;  %v1725_v23 = vld [vmem:[%s2562_s1 + $0x30] sm:$0xff] }
  0x11   : > { %2033 = vmatprep.subr.mxu1 %v265_v1  ;;  %1884 = vmatprep.subr.mxu0 %v265_v1  ;;  %s2038_s4 = smul.u32 24, %s2189_s25  ;;  %225 = vst.msk [vmem:[#allocation2 + $0x48] sm:$0xff] %vm215_vm1, %v1687_v5  ;;  %216 = vst.msk [vmem:[#allocation2] sm:$0xff] %vm215_vm1, %v1687_v5  ;;  %v1706_v10 = vld [vmem:[%s2562_s1 + $0x20] sm:$0xff]  ;;  %v1726_v18 = vld [vmem:[%s2562_s1 + $0x38] sm:$0xff] }
  0x12   : > { %2036 = vmatpush3.msra.mxu1 %v265_v1  ;;  %1885 = vmatpush3.msra.mxu0 %v265_v1  ;;  %217 = vst.msk [vmem:[#allocation2 + $0x8] sm:$0xff] %vm215_vm1, %v1687_v5  ;;  %218 = vst.msk [vmem:[#allocation2 + $0x10] sm:$0xff] %vm215_vm1, %v1687_v5  ;;  %v1747_v20 = vld [vmem:[%s2562_s1 + $0x58] sm:$0xf]  ;;  %v1767_v26 = vld [vmem:[%s2562_s1 + $0x70] sm:$0xf] }
  0x13   : > { %2034 = vmatprep.subr.mxu1 %v264_v2  ;;  %1886 = vmatprep.subr.mxu0 %v264_v2  ;;  %219 = vst.msk [vmem:[#allocation2 + $0x18] sm:$0xff] %vm215_vm1, %v1687_v5  ;;  %220 = vst.msk [vmem:[#allocation2 + $0x20] sm:$0xff] %vm215_vm1, %v1687_v5  ;;  %s195_s7 = sadd.s32 %s2039_s26, %s2038_s4  ;;  %v1746_v28 = vld [vmem:[%s2562_s1 + $0x50] sm:$0xff]  ;;  %v1766_v29 = vld [vmem:[%s2562_s1 + $0x68] sm:$0xff] }
  0x14   : > { %2037 = vmatpush3.msra.mxu1 %v264_v2  ;;  %1887 = vmatpush3.msra.mxu0 %v264_v2  ;;  %221 = vst.msk [vmem:[#allocation2 + $0x28] sm:$0xff] %vm215_vm1, %v1687_v5  ;;  %222 = vst.msk [vmem:[#allocation2 + $0x30] sm:$0xff] %vm215_vm1, %v1687_v5  ;;  %s1683_s8 = sshll.u32 %s195_s7, 3  ;;  %v1745_v30 = vld [vmem:[%s2562_s1 + $0x48] sm:$0xff]  ;;  %v1765_v31 = vld [vmem:[%s2562_s1 + $0x60] sm:$0xff] }
  0x15   : > { %223 = vst.msk [vmem:[#allocation2 + $0x38] sm:$0xff] %vm215_vm1, %v1687_v5  ;;  %224 = vst.msk [vmem:[#allocation2 + $0x40] sm:$0xff] %vm215_vm1, %v1687_v5  ;;  %1912 = vmatprep.subr.msk.mxu1 %vm316_vm0, %v1707_v3  ;;  %1942 = vmatprep.subr.msk.mxu0 %vm316_vm0, %v1727_v4  ;;  %s2223_s11 = scalar_lea.vmem %s2561_s0, %s1683_s8 }
  0x16   : > { %226 = vst.msk [vmem:[#allocation2 + $0x50] sm:$0xff] %vm215_vm1, %v1687_v5  ;;  %227 = vst.msk [vmem:[#allocation2 + $0x58] sm:$0xff] %vm215_vm1, %v1687_v5  ;;  %v2226_v6 = vld [vmem:[%s2223_s11 + $0x40] sm:$0xff]  ;;  %v2229_v7 = vld [vmem:[%s2223_s11 + $0x48] sm:$0xff] }
  0x17   : > { %228 = vst.msk [vmem:[#allocation2 + $0x60] sm:$0xff] %vm215_vm1, %v1687_v5  ;;  %229 = vst.msk [vmem:[#allocation2 + $0x68] sm:$0xff] %vm215_vm1, %v1687_v5  ;;  %v2232_v8 = vld [vmem:[%s2223_s11 + $0x50] sm:$0xff]  ;;  %1900 = vmatprep.mubr.msk.f32.mxu1 %vm267_vm2, %v2226_v6  ;;  %v232_v9 = vld [vmem:[%s2223_s11] sm:$0xff] }
  0x18   : > { %230 = vst.msk [vmem:[#allocation2 + $0x70] sm:$0xff] %vm215_vm1, %v1687_v5  ;;  %231 = vst.msk [vmem:[#allocation2 + $0x78] sm:$0xff] %vm215_vm1, %v1687_v5  ;;  %v233_v11 = vld [vmem:[%s2223_s11 + $0x8] sm:$0xff]  ;;  %1901 = vmatmul.mubr.msk.f32.vlgmr.msra.gmra.mxu1 %vm267_vm2, %v2229_v7  ;;  %1888 = vmatprep.mubr.msk.f32.mxu0 %vm267_vm2, %v232_v9  ;;  %v234_v12 = vld [vmem:[%s2223_s11 + $0x10] sm:$0xff] }
  0x19   : > { %1913 = vmatpush3.msk.msra.mxu1 %vm316_vm0, %v1707_v3  ;;  %1903 = vmatprep.mubr.msk.f32.mxu1 %vm267_vm2, %v2232_v8  ;;  %v2249_v13 = vld [vmem:[%s2223_s11 + $0x58] sm:$0xff]  ;;  %v2256_v15 = vld [vmem:[%s2223_s11 + $0x60] sm:$0xff]  ;;  %v2269_v19 = vld [vmem:[%s2223_s11 + $0x68] sm:$0xff] }
  0x1a   : > { %1914 = vmatprep.subr.mxu1 %v1706_v10  ;;  %1889 = vmatmul.mubr.msk.f32.vlgmr.msra.gmra.mxu0 %vm267_vm2, %v233_v11  ;;  %v235_v16 = vld [vmem:[%s2223_s11 + $0x18] sm:$0xff]  ;;  %v236_v17 = vld [vmem:[%s2223_s11 + $0x20] sm:$0xff]  ;;  %v2277_v21 = vld [vmem:[%s2223_s11 + $0x70] sm:$0xff] }
  0x1b   : > { %1915 = vmatpush3.msra.mxu1 %v1706_v10  ;;  %1891 = vmatprep.mubr.msk.f32.mxu0 %vm267_vm2, %v234_v12  ;;  %v237_v22 = vld [vmem:[%s2223_s11 + $0x28] sm:$0xff]  ;;  %v238_v24 = vld [vmem:[%s2223_s11 + $0x30] sm:$0xff]  ;;  %v2291_v25 = vld [vmem:[%s2223_s11 + $0x78] sm:$0xff] }
  0x1c   : > { %1904 = vmatmul.mubr.msk.f32.gmra.mxu1 %vm267_vm2, %v2249_v13  ;;  %1916 = vmatprep.subr.mxu1 %v1705_v14  ;;  %v239_v27 = vld [vmem:[%s2223_s11 + $0x38] sm:$0xff]  ;;  %v511_v32 = vld [vmem:[%s2223_s11 + $0x80] sm:$0xff]  ;;  %v775_v33 = vld [vmem:[%s2223_s11 + $0x90] sm:$0xff] }
  0x1d   : > { %1906 = vmatprep.mubr.msk.f32.mxu1 %vm267_vm2, %v2256_v15  ;;  %1943 = vmatpush3.msk.msra.mxu0 %vm316_vm0, %v1727_v4  ;;  %v512_v34 = vld [vmem:[%s2223_s11 + $0x88] sm:$0xff]  ;;  %v776_v35 = vld [vmem:[%s2223_s11 + $0x98] sm:$0xff]  ;;  %v1039_v36 = vld [vmem:[%s2223_s11 + $0xa0] sm:$0xff] }
  0x1e   : > { %1892 = vmatmul.mubr.msk.f32.gmra.mxu0 %vm267_vm2, %v235_v16  ;;  %1917 = vmatpush3.msra.mxu1 %v1705_v14  ;;  %v1303_v37 = vld [vmem:[%s2223_s11 + $0xb0] sm:$0xff]  ;;  %v1040_v38 = vld [vmem:[%s2223_s11 + $0xa8] sm:$0xff]  ;;  %v1304_v39 = vld [vmem:[%s2223_s11 + $0xb8] sm:$0xff]  ;;  %s1684_s11 = sshll.u32 %s2102_s12, 4  ;;  %s1685_s12 = sshll.u32 %s2577_s13, 5 }
  0x1f   : > { %1894 = vmatprep.mubr.msk.f32.mxu0 %vm267_vm2, %v236_v17  ;;  %1944 = vmatprep.subr.mxu0 %v1726_v18  ;;  %v257_v40 = vld [vmem:[#allocation2 + $0x48] sm:$0xff]  ;;  %v256_v42 = vld [vmem:[#allocation2 + $0x40] sm:$0xff]  ;;  %v259_v46 = vld [vmem:[#allocation2 + $0x58] sm:$0xff]  ;;  %p2467_p7 = scmp.lt.s32.totalorder %s1684_s11, 31 }
  0x20   : > { %1907 = vmatmul.mubr.msk.f32.gmra.mxu1 %vm267_vm2, %v2269_v19  ;;  %1972 = vmatprep.subr.msk.mxu1 %vm316_vm0, %v1747_v20  ;;  %v249_v43 = vld [vmem:[#allocation2 + $0x8] sm:$0xff]  ;;  %v248_v48 = vld [vmem:[#allocation2] sm:$0xff]  ;;  %v258_v52 = vld [vmem:[#allocation2 + $0x50] sm:$0xff] }
  0x21   : > { %1909 = vmatprep.mubr.msk.f32.mxu1 %vm267_vm2, %v2277_v21  ;;  %1945 = vmatpush3.msra.mxu0 %v1726_v18  ;;  %v251_v54 = vld [vmem:[#allocation2 + $0x18] sm:$0xff]  ;;  %v261_v58 = vld [vmem:[#allocation2 + $0x68] sm:$0xff]  ;;  %v250_v60 = vld [vmem:[#allocation2 + $0x10] sm:$0xff]  ;;  %s2579_s11 = smov (!%p2467_p7, %s1684_s11), 31 }
  0x22   : > { %1895 = vmatmul.mubr.msk.f32.gmra.mxu0 %vm267_vm2, %v237_v22  ;;  %1946 = vmatprep.subr.mxu0 %v1725_v23  ;;  %v260_v0 = vld [vmem:[#allocation2 + $0x60] sm:$0xff]  ;;  %v253_v2 = vld [vmem:[#allocation2 + $0x28] sm:$0xff]  ;;  %v255_v14 = vld [vmem:[#allocation2 + $0x38] sm:$0xff]  ;;  %s204_s21 = sadd.s32 %s1685_s12, %s2579_s11 }
  0x23   : > { %1897 = vmatprep.mubr.msk.f32.mxu0 %vm267_vm2, %v238_v24  ;;  %1947 = vmatpush3.msra.mxu0 %v1725_v23  ;;  %s1686_s13 = sshll.u32 %s204_s21, 3 }
  0x24   : > { %1910 = vmatmul.mubr.msk.f32.gmra.mxu1 %vm267_vm2, %v2291_v25  ;;  %2002 = vmatprep.subr.msk.mxu0 %vm316_vm0, %v1767_v26  ;;  %s2491_s24 = scalar_lea.vmem %s2564_s3, %s1686_s13 }
  0x25   : > { %1918 = vmatprep.mubr.msk.f32.mxu1 %vm267_vm2, %v234_v12  ;;  %v262_v12 = vld [vmem:[#allocation2 + $0x70] sm:$0xff] }
  0x26   : > { %1898 = vmatmul.mubr.msk.f32.gmra.mxu0 %vm267_vm2, %v239_v27 }
  0x27   : > { %1948 = vmatprep.mubr.msk.f32.mxu0 %vm267_vm2, %v236_v17 }
  0x28   : > { %1919 = vmatmul.mubr.msk.f32.vlgmr.msra.gmra.mxu1 %vm267_vm2, %v235_v16 }
  0x29   : > { %1973 = vmatpush3.msk.msra.mxu1 %vm316_vm0, %v1747_v20  ;;  %1921 = vmatprep.mubr.msk.f32.mxu1 %vm267_vm2, %v236_v17  ;;  %v254_v20 = vld [vmem:[#allocation2 + $0x30] sm:$0xff] }
  0x2a   : > { %1949 = vmatmul.mubr.msk.f32.vlgmr.msra.gmra.mxu0 %vm267_vm2, %v237_v22  ;;  %1974 = vmatprep.subr.mxu1 %v1746_v28 }
  0x2b   : > { %2003 = vmatpush3.msk.msra.mxu0 %vm316_vm0, %v1767_v26  ;;  %1951 = vmatprep.mubr.msk.f32.mxu0 %vm267_vm2, %v238_v24 }
  0x2c   : > { %1922 = vmatmul.mubr.msk.f32.gmra.mxu1 %vm267_vm2, %v237_v22  ;;  %2004 = vmatprep.subr.mxu0 %v1766_v29 }
  0x2d   : > { %1924 = vmatprep.mubr.msk.f32.mxu1 %vm267_vm2, %v238_v24  ;;  %1975 = vmatpush3.msra.mxu1 %v1746_v28 }
  0x2e   : > { %1952 = vmatmul.mubr.msk.f32.gmra.mxu0 %vm267_vm2, %v239_v27  ;;  %1976 = vmatprep.subr.mxu1 %v1745_v30 }
  0x2f   : > { %1954 = vmatprep.mubr.msk.f32.mxu0 %vm267_vm2, %v2226_v6  ;;  %2005 = vmatpush3.msra.mxu0 %v1766_v29 }
  0x30   : > { %1925 = vmatmul.mubr.msk.f32.gmra.mxu1 %vm267_vm2, %v239_v27  ;;  %2006 = vmatprep.subr.mxu0 %v1765_v31 }
  0x31   : > { %1927 = vmatprep.mubr.msk.f32.mxu1 %vm267_vm2, %v2226_v6  ;;  %1977 = vmatpush3.msra.mxu1 %v1745_v30 }
  0x32   : > { %1955 = vmatmul.mubr.msk.f32.gmra.mxu0 %vm267_vm2, %v2229_v7 }
  0x33   : > { %1957 = vmatprep.mubr.msk.f32.mxu0 %vm267_vm2, %v2232_v8  ;;  %2007 = vmatpush3.msra.mxu0 %v1765_v31 }
  0x34   : > { %1928 = vmatmul.mubr.msk.f32.gmra.mxu1 %vm267_vm2, %v2229_v7 }
  0x35   : > { %1930 = vmatprep.mubr.msk.f32.mxu1 %vm267_vm2, %v2232_v8 }
  0x36   : > { %1958 = vmatmul.mubr.msk.f32.gmra.mxu0 %vm267_vm2, %v2249_v13 }
  0x37   : > { %1960 = vmatprep.mubr.msk.f32.mxu0 %vm267_vm2, %v2256_v15 }
  0x38   : > { %1931 = vmatmul.mubr.msk.f32.gmra.mxu1 %vm267_vm2, %v2249_v13 }
  0x39   : > { %1933 = vmatprep.mubr.msk.f32.mxu1 %vm267_vm2, %v2256_v15 }
  0x3a   : > { %1961 = vmatmul.mubr.msk.f32.gmra.mxu0 %vm267_vm2, %v2269_v19 }
  0x3b   : > { %1963 = vmatprep.mubr.msk.f32.mxu0 %vm267_vm2, %v2277_v21 }
  0x3c   : > { %1934 = vmatmul.mubr.msk.f32.gmra.mxu1 %vm267_vm2, %v2269_v19 }
  0x3d   : > { %1936 = vmatprep.mubr.msk.f32.mxu1 %vm267_vm2, %v2277_v21 }
  0x3e   : > { %1964 = vmatmul.mubr.msk.f32.gmra.mxu0 %vm267_vm2, %v2291_v25 }
  0x3f   : > { %1966 = vmatprep.mubr.msk.f32.mxu0 %vm267_vm2, %v511_v32 }
  0x40   : > { %1937 = vmatmul.mubr.msk.f32.gmra.mxu1 %vm267_vm2, %v2291_v25 }
  0x41   : > { %1939 = vmatprep.mubr.msk.f32.mxu1 %vm267_vm2, %v511_v32 }
  0x42   : > { %1967 = vmatmul.mubr.msk.f32.gmra.mxu0 %vm267_vm2, %v512_v34 }
  0x43   : > { %1969 = vmatprep.mubr.msk.f32.mxu0 %vm267_vm2, %v775_v33 }
  0x44   : > { %1940 = vmatmul.mubr.msk.f32.gmra.mxu1 %vm267_vm2, %v512_v34 }
  0x45   : > { %1978 = vmatprep.mubr.msk.f32.mxu1 %vm267_vm2, %v238_v24 }
  0x46   : > { %1970 = vmatmul.mubr.msk.f32.gmra.mxu0 %vm267_vm2, %v776_v35 }
  0x47   : > { %2008 = vmatprep.mubr.msk.f32.mxu0 %vm267_vm2, %v2226_v6 }
  0x48   : > { %1979 = vmatmul.mubr.msk.f32.vlgmr.msra.gmra.mxu1 %vm267_vm2, %v239_v27 }
  0x49   : > { %1981 = vmatprep.mubr.msk.f32.mxu1 %vm267_vm2, %v2226_v6  ;;  %v263_v6 = vld [vmem:[#allocation2 + $0x78] sm:$0xff] }
  0x4a   : > { %2009 = vmatmul.mubr.msk.f32.vlgmr.msra.gmra.mxu0 %vm267_vm2, %v2229_v7 }
  0x4b   : > { %2011 = vmatprep.mubr.msk.f32.mxu0 %vm267_vm2, %v2232_v8 }
  0x4c   : > { %1982 = vmatmul.mubr.msk.f32.gmra.mxu1 %vm267_vm2, %v2229_v7 }
  0x4d   : > { %1984 = vmatprep.mubr.msk.f32.mxu1 %vm267_vm2, %v2232_v8  ;;  %v252_v8 = vld [vmem:[#allocation2 + $0x20] sm:$0xff] }
  0x4e   : > { %2012 = vmatmul.mubr.msk.f32.gmra.mxu0 %vm267_vm2, %v2249_v13 }
  0x4f   : > { %2014 = vmatprep.mubr.msk.f32.mxu0 %vm267_vm2, %v2256_v15 }
  0x50   : > { %1985 = vmatmul.mubr.msk.f32.gmra.mxu1 %vm267_vm2, %v2249_v13 }
  0x51   : > { %1987 = vmatprep.mubr.msk.f32.mxu1 %vm267_vm2, %v2256_v15 }
  0x52   : > { %2015 = vmatmul.mubr.msk.f32.gmra.mxu0 %vm267_vm2, %v2269_v19 }
  0x53   : > { %2017 = vmatprep.mubr.msk.f32.mxu0 %vm267_vm2, %v2277_v21 }
  0x54   : > { %1988 = vmatmul.mubr.msk.f32.gmra.mxu1 %vm267_vm2, %v2269_v19 }
  0x55   : > { %1990 = vmatprep.mubr.msk.f32.mxu1 %vm267_vm2, %v2277_v21 }
  0x56   : > { %2018 = vmatmul.mubr.msk.f32.gmra.mxu0 %vm267_vm2, %v2291_v25 }
  0x57   : > { %2020 = vmatprep.mubr.msk.f32.mxu0 %vm267_vm2, %v511_v32 }
  0x58   : > { %1991 = vmatmul.mubr.msk.f32.gmra.mxu1 %vm267_vm2, %v2291_v25 }
  0x59   : > { %1993 = vmatprep.mubr.msk.f32.mxu1 %vm267_vm2, %v511_v32 }
  0x5a   : > { %2021 = vmatmul.mubr.msk.f32.gmra.mxu0 %vm267_vm2, %v512_v34 }
  0x5b   : > { %2023 = vmatprep.mubr.msk.f32.mxu0 %vm267_vm2, %v775_v33 }
  0x5c   : > { %1994 = vmatmul.mubr.msk.f32.gmra.mxu1 %vm267_vm2, %v512_v34 }
  0x5d   : > { %1996 = vmatprep.mubr.msk.f32.mxu1 %vm267_vm2, %v775_v33 }
  0x5e   : > { %2024 = vmatmul.mubr.msk.f32.gmra.mxu0 %vm267_vm2, %v776_v35 }
  0x5f   : > { %2026 = vmatprep.mubr.msk.f32.mxu0 %vm267_vm2, %v1039_v36 }
  0x60   : > { %1997 = vmatmul.mubr.msk.f32.gmra.mxu1 %vm267_vm2, %v776_v35 }
  0x61   : > { %1999 = vmatprep.mubr.msk.f32.mxu1 %vm267_vm2, %v1039_v36 }
  0x62   : > { %2027 = vmatmul.mubr.msk.f32.gmra.mxu0 %vm267_vm2, %v1040_v38 }
  0x63   : > { %2029 = vmatprep.mubr.msk.f32.mxu0 %vm267_vm2, %v1303_v37 }
  0x64   : > { %2000 = vmatmul.mubr.msk.f32.gmra.mxu1 %vm267_vm2, %v1040_v38 }
  0x66   : > { %2030 = vmatmul.mubr.msk.f32.gmra.mxu0 %vm267_vm2, %v1304_v39 }
  0xd8   : > { %v1902_v41 = vpop.f32.mrf.mxu1 }
  0xd9   : > { %v474_v44 = vadd.f32 %v1902_v41, %v257_v40 }
  0xda   : > { %v426_v45 = vpop.f32.mrf.mxu1  ;;  %v1890_v47 = vpop.f32.mrf.mxu0 }
  0xdb   : > { %490 = vst.msk [vmem:[#allocation2 + $0x48] sm:$0xff] %vm215_vm1, %v474_v44  ;;  %v473_v49 = vadd.f32 %v426_v45, %v256_v42  ;;  %v466_v50 = vadd.f32 %v1890_v47, %v249_v43 }
  0xdc   : > { %v1905_v51 = vpop.f32.mrf.mxu1  ;;  %v386_v53 = vpop.f32.mrf.mxu0 }
  0xdd   : > { %489 = vst.msk [vmem:[#allocation2 + $0x40] sm:$0xff] %vm215_vm1, %v473_v49  ;;  %v476_v55 = vadd.f32 %v1905_v51, %v259_v46  ;;  %482 = vst.msk [vmem:[#allocation2 + $0x8] sm:$0xff] %vm215_vm1, %v466_v50  ;;  %v465_v56 = vadd.f32 %v386_v53, %v248_v48 }
  0xde   : > { %v436_v57 = vpop.f32.mrf.mxu1  ;;  %v1893_v59 = vpop.f32.mrf.mxu0 }
  0xdf   : > { %492 = vst.msk [vmem:[#allocation2 + $0x58] sm:$0xff] %vm215_vm1, %v476_v55  ;;  %v475_v61 = vadd.f32 %v436_v57, %v258_v52  ;;  %481 = vst.msk [vmem:[#allocation2] sm:$0xff] %vm215_vm1, %v465_v56  ;;  %v468_v62 = vadd.f32 %v1893_v59, %v251_v54 }
  0xe0   : > { %v1908_v63 = vpop.f32.mrf.mxu1  ;;  %v396_v1 = vpop.f32.mrf.mxu0 }
  0xe1   : > { %491 = vst.msk [vmem:[#allocation2 + $0x50] sm:$0xff] %vm215_vm1, %v475_v61  ;;  %v478_v3 = vadd.f32 %v1908_v63, %v261_v58  ;;  %484 = vst.msk [vmem:[#allocation2 + $0x18] sm:$0xff] %vm215_vm1, %v468_v62  ;;  %v467_v4 = vadd.f32 %v396_v1, %v250_v60 }
  0xe2   : > { %v446_v5 = vpop.f32.mrf.mxu1  ;;  %v1896_v7 = vpop.f32.mrf.mxu0  ;;  %v522_v62 = vld [vmem:[#allocation2 + $0x48] sm:$0xff] }
  0xe3   : > { %494 = vst.msk [vmem:[#allocation2 + $0x68] sm:$0xff] %vm215_vm1, %v478_v3  ;;  %v477_v9 = vadd.f32 %v446_v5, %v260_v0  ;;  %483 = vst.msk [vmem:[#allocation2 + $0x10] sm:$0xff] %vm215_vm1, %v467_v4  ;;  %v470_v10 = vadd.f32 %v1896_v7, %v253_v2 }
  0xe4   : > { %v1911_v11 = vpop.f32.mrf.mxu1  ;;  %v406_v13 = vpop.f32.mrf.mxu0  ;;  %v514_v18 = vld [vmem:[#allocation2 + $0x8] sm:$0xff]  ;;  %v521_v4 = vld [vmem:[#allocation2 + $0x40] sm:$0xff] }
  0xe5   : > { %493 = vst.msk [vmem:[#allocation2 + $0x60] sm:$0xff] %vm215_vm1, %v477_v9  ;;  %v480_v15 = vadd.f32 %v1911_v11, %v263_v6  ;;  %486 = vst.msk [vmem:[#allocation2 + $0x28] sm:$0xff] %vm215_vm1, %v470_v10  ;;  %v469_v16 = vadd.f32 %v406_v13, %v252_v8 }
  0xe6   : > { %v456_v17 = vpop.f32.mrf.mxu1  ;;  %v1899_v19 = vpop.f32.mrf.mxu0  ;;  %v513_v24 = vld [vmem:[#allocation2] sm:$0xff]  ;;  %v524_v10 = vld [vmem:[#allocation2 + $0x58] sm:$0xff] }
  0xe7   : > { %496 = vst.msk [vmem:[#allocation2 + $0x78] sm:$0xff] %vm215_vm1, %v480_v15  ;;  %v479_v21 = vadd.f32 %v456_v17, %v262_v12  ;;  %485 = vst.msk [vmem:[#allocation2 + $0x20] sm:$0xff] %vm215_vm1, %v469_v16  ;;  %v472_v22 = vadd.f32 %v1899_v19, %v255_v14 }
  0xe8   : > { %v1920_v23 = vpop.f32.mrf.mxu1  ;;  %v416_v25 = vpop.f32.mrf.mxu0  ;;  %v516_v29 = vld [vmem:[#allocation2 + $0x18] sm:$0xff]  ;;  %v523_v16 = vld [vmem:[#allocation2 + $0x50] sm:$0xff] }
  0xe9   : > { %495 = vst.msk [vmem:[#allocation2 + $0x70] sm:$0xff] %vm215_vm1, %v479_v21  ;;  %v730_v26 = vadd.f32 %v1920_v23, %v514_v18  ;;  %488 = vst.msk [vmem:[#allocation2 + $0x38] sm:$0xff] %vm215_vm1, %v472_v22  ;;  %v471_v27 = vadd.f32 %v416_v25, %v254_v20 }
  0xea   : > { %v650_v28 = vpop.f32.mrf.mxu1  ;;  %v1950_v30 = vpop.f32.mrf.mxu0  ;;  %v515_v33 = vld [vmem:[#allocation2 + $0x10] sm:$0xff]  ;;  %v526_v22 = vld [vmem:[#allocation2 + $0x68] sm:$0xff] }
  0xeb   : > { %746 = vst.msk [vmem:[#allocation2 + $0x8] sm:$0xff] %vm215_vm1, %v730_v26  ;;  %v729_v31 = vadd.f32 %v650_v28, %v513_v24  ;;  %487 = vst.msk [vmem:[#allocation2 + $0x30] sm:$0xff] %vm215_vm1, %v471_v27 }
  0xec   : > { %v1923_v32 = vpop.f32.mrf.mxu1  ;;  %v914_v34 = vpop.f32.mrf.mxu0  ;;  %v518_v37 = vld [vmem:[#allocation2 + $0x28] sm:$0xff]  ;;  %v525_v28 = vld [vmem:[#allocation2 + $0x60] sm:$0xff] }
  0xed   : > { %745 = vst.msk [vmem:[#allocation2] sm:$0xff] %vm215_vm1, %v729_v31  ;;  %v732_v35 = vadd.f32 %v1923_v32, %v516_v29 }
  0xee   : > { %v660_v36 = vpop.f32.mrf.mxu1  ;;  %v1953_v38 = vpop.f32.mrf.mxu0  ;;  %v517_v41 = vld [vmem:[#allocation2 + $0x20] sm:$0xff] }
  0xef   : > { %748 = vst.msk [vmem:[#allocation2 + $0x18] sm:$0xff] %vm215_vm1, %v732_v35  ;;  %v731_v39 = vadd.f32 %v660_v36, %v515_v33 }
  0xf0   : > { %v1926_v40 = vpop.f32.mrf.mxu1  ;;  %v924_v42 = vpop.f32.mrf.mxu0  ;;  %v520_v46 = vld [vmem:[#allocation2 + $0x38] sm:$0xff] }
  0xf1   : > { %747 = vst.msk [vmem:[#allocation2 + $0x10] sm:$0xff] %vm215_vm1, %v731_v39  ;;  %v734_v43 = vadd.f32 %v1926_v40, %v518_v37  ;;  %v527_v40 = vld [vmem:[#allocation2 + $0x70] sm:$0xff] }
  0xf2   : > { %v778_v44 = vld [vmem:[#allocation2 + $0x8] sm:$0xff]  ;;  %v670_v45 = vpop.f32.mrf.mxu1  ;;  %v1956_v47 = vpop.f32.mrf.mxu0  ;;  %v519_v52 = vld [vmem:[#allocation2 + $0x30] sm:$0xff] }
  0xf3   : > { %750 = vst.msk [vmem:[#allocation2 + $0x28] sm:$0xff] %vm215_vm1, %v734_v43  ;;  %v994_v48 = vadd.f32 %v1950_v30, %v778_v44  ;;  %v733_v49 = vadd.f32 %v670_v45, %v517_v41 }
  0xf4   : > { %v777_v50 = vld [vmem:[#allocation2] sm:$0xff]  ;;  %v1929_v51 = vpop.f32.mrf.mxu1  ;;  %v934_v53 = vpop.f32.mrf.mxu0 }
  0xf5   : > { %1010 = vst.msk [vmem:[#allocation2 + $0x8] sm:$0xff] %vm215_vm1, %v994_v48  ;;  %749 = vst.msk [vmem:[#allocation2 + $0x20] sm:$0xff] %vm215_vm1, %v733_v49  ;;  %v993_v54 = vadd.f32 %v914_v34, %v777_v50  ;;  %v736_v55 = vadd.f32 %v1929_v51, %v520_v46  ;;  %v528_v34 = vld [vmem:[#allocation2 + $0x78] sm:$0xff] }
  0xf6   : > { %v780_v56 = vld [vmem:[#allocation2 + $0x18] sm:$0xff]  ;;  %v680_v57 = vpop.f32.mrf.mxu1  ;;  %v1959_v58 = vpop.f32.mrf.mxu0 }
  0xf7   : > { %1009 = vst.msk [vmem:[#allocation2] sm:$0xff] %vm215_vm1, %v993_v54  ;;  %752 = vst.msk [vmem:[#allocation2 + $0x38] sm:$0xff] %vm215_vm1, %v736_v55  ;;  %v996_v59 = vadd.f32 %v1953_v38, %v780_v56  ;;  %v735_v60 = vadd.f32 %v680_v57, %v519_v52 }
  0xf8   : > { %v779_v61 = vld [vmem:[#allocation2 + $0x10] sm:$0xff]  ;;  %v1932_v63 = vpop.f32.mrf.mxu1  ;;  %v944_v0 = vpop.f32.mrf.mxu0 }
  0xf9   : > { %1012 = vst.msk [vmem:[#allocation2 + $0x18] sm:$0xff] %vm215_vm1, %v996_v59  ;;  %751 = vst.msk [vmem:[#allocation2 + $0x30] sm:$0xff] %vm215_vm1, %v735_v60  ;;  %v995_v1 = vadd.f32 %v924_v42, %v779_v61  ;;  %v738_v2 = vadd.f32 %v1932_v63, %v522_v62 }
  0xfa   : > { %v782_v3 = vld [vmem:[#allocation2 + $0x28] sm:$0xff]  ;;  %v690_v5 = vpop.f32.mrf.mxu1  ;;  %v1962_v6 = vpop.f32.mrf.mxu0 }
  0xfb   : > { %1011 = vst.msk [vmem:[#allocation2 + $0x10] sm:$0xff] %vm215_vm1, %v995_v1  ;;  %754 = vst.msk [vmem:[#allocation2 + $0x48] sm:$0xff] %vm215_vm1, %v738_v2  ;;  %v998_v7 = vadd.f32 %v1956_v47, %v782_v3  ;;  %v737_v8 = vadd.f32 %v690_v5, %v521_v4 }
  0xfc   : > { %v781_v9 = vld [vmem:[#allocation2 + $0x20] sm:$0xff]  ;;  %v1935_v11 = vpop.f32.mrf.mxu1  ;;  %v954_v12 = vpop.f32.mrf.mxu0  ;;  %v1042_v46 = vld [vmem:[#allocation2 + $0x8] sm:$0xff] }
  0xfd   : > { %1014 = vst.msk [vmem:[#allocation2 + $0x28] sm:$0xff] %vm215_vm1, %v998_v7  ;;  %753 = vst.msk [vmem:[#allocation2 + $0x40] sm:$0xff] %vm215_vm1, %v737_v8  ;;  %v997_v13 = vadd.f32 %v934_v53, %v781_v9  ;;  %v740_v14 = vadd.f32 %v1935_v11, %v524_v10 }
  0xfe   : > { %v784_v15 = vld [vmem:[#allocation2 + $0x38] sm:$0xff]  ;;  %v700_v17 = vpop.f32.mrf.mxu1  ;;  %v1965_v18 = vpop.f32.mrf.mxu0  ;;  %v1041_v52 = vld [vmem:[#allocation2] sm:$0xff] }
  0xff   : > { %1013 = vst.msk [vmem:[#allocation2 + $0x20] sm:$0xff] %vm215_vm1, %v997_v13  ;;  %756 = vst.msk [vmem:[#allocation2 + $0x58] sm:$0xff] %vm215_vm1, %v740_v14  ;;  %v1000_v19 = vadd.f32 %v1959_v58, %v784_v15  ;;  %v739_v20 = vadd.f32 %v700_v17, %v523_v16 }
 0x100   : > { %v783_v21 = vld [vmem:[#allocation2 + $0x30] sm:$0xff]  ;;  %v1938_v23 = vpop.f32.mrf.mxu1  ;;  %v964_v24 = vpop.f32.mrf.mxu0  ;;  %v1044_v58 = vld [vmem:[#allocation2 + $0x18] sm:$0xff] }
 0x101   : > { %1016 = vst.msk [vmem:[#allocation2 + $0x38] sm:$0xff] %vm215_vm1, %v1000_v19  ;;  %755 = vst.msk [vmem:[#allocation2 + $0x50] sm:$0xff] %vm215_vm1, %v739_v20  ;;  %v999_v25 = vadd.f32 %v944_v0, %v783_v21  ;;  %v742_v26 = vadd.f32 %v1938_v23, %v526_v22 }
 0x102   : > { %v786_v27 = vld [vmem:[#allocation2 + $0x48] sm:$0xff]  ;;  %v710_v29 = vpop.f32.mrf.mxu1  ;;  %v1968_v30 = vpop.f32.mrf.mxu0  ;;  %v1043_v0 = vld [vmem:[#allocation2 + $0x10] sm:$0xff] }
 0x103   : > { %1015 = vst.msk [vmem:[#allocation2 + $0x30] sm:$0xff] %vm215_vm1, %v999_v25  ;;  %758 = vst.msk [vmem:[#allocation2 + $0x68] sm:$0xff] %vm215_vm1, %v742_v26  ;;  %v1002_v31 = vadd.f32 %v1962_v6, %v786_v27  ;;  %v741_v32 = vadd.f32 %v710_v29, %v525_v28 }
 0x104   : > { %v785_v33 = vld [vmem:[#allocation2 + $0x40] sm:$0xff]  ;;  %v1941_v35 = vpop.f32.mrf.mxu1  ;;  %v974_v36 = vpop.f32.mrf.mxu0  ;;  %v1046_v6 = vld [vmem:[#allocation2 + $0x28] sm:$0xff] }
 0x105   : > { %1018 = vst.msk [vmem:[#allocation2 + $0x48] sm:$0xff] %vm215_vm1, %v1002_v31  ;;  %757 = vst.msk [vmem:[#allocation2 + $0x60] sm:$0xff] %vm215_vm1, %v741_v32  ;;  %v1001_v37 = vadd.f32 %v954_v12, %v785_v33  ;;  %v744_v38 = vadd.f32 %v1941_v35, %v528_v34 }
 0x106   : > { %v788_v39 = vld [vmem:[#allocation2 + $0x58] sm:$0xff]  ;;  %v720_v41 = vpop.f32.mrf.mxu1  ;;  %v1971_v42 = vpop.f32.mrf.mxu0  ;;  %v1045_v12 = vld [vmem:[#allocation2 + $0x20] sm:$0xff] }
 0x107   : > { %1017 = vst.msk [vmem:[#allocation2 + $0x40] sm:$0xff] %vm215_vm1, %v1001_v37  ;;  %760 = vst.msk [vmem:[#allocation2 + $0x78] sm:$0xff] %vm215_vm1, %v744_v38  ;;  %v1004_v43 = vadd.f32 %v1965_v18, %v788_v39  ;;  %v743_v44 = vadd.f32 %v720_v41, %v527_v40 }
 0x108   : > { %v787_v45 = vld [vmem:[#allocation2 + $0x50] sm:$0xff]  ;;  %v1980_v47 = vpop.f32.mrf.mxu1  ;;  %v984_v48 = vpop.f32.mrf.mxu0  ;;  %v1048_v18 = vld [vmem:[#allocation2 + $0x38] sm:$0xff] }
 0x109   : > { %1020 = vst.msk [vmem:[#allocation2 + $0x58] sm:$0xff] %vm215_vm1, %v1004_v43  ;;  %759 = vst.msk [vmem:[#allocation2 + $0x70] sm:$0xff] %vm215_vm1, %v743_v44  ;;  %v1003_v49 = vadd.f32 %v964_v24, %v787_v45  ;;  %v1258_v50 = vadd.f32 %v1980_v47, %v1042_v46 }
 0x10a   : > { %v790_v51 = vld [vmem:[#allocation2 + $0x68] sm:$0xff]  ;;  %v1178_v53 = vpop.f32.mrf.mxu1  ;;  %v2010_v54 = vpop.f32.mrf.mxu0  ;;  %v1047_v24 = vld [vmem:[#allocation2 + $0x30] sm:$0xff] }
 0x10b   : > { %1019 = vst.msk [vmem:[#allocation2 + $0x50] sm:$0xff] %vm215_vm1, %v1003_v49  ;;  %v1006_v55 = vadd.f32 %v1968_v30, %v790_v51  ;;  %1274 = vst.msk [vmem:[#allocation2 + $0x8] sm:$0xff] %vm215_vm1, %v1258_v50  ;;  %v1257_v56 = vadd.f32 %v1178_v53, %v1041_v52 }
 0x10c   : > { %v789_v57 = vld [vmem:[#allocation2 + $0x60] sm:$0xff]  ;;  %v1983_v59 = vpop.f32.mrf.mxu1  ;;  %v1442_v60 = vpop.f32.mrf.mxu0  ;;  %v1050_v30 = vld [vmem:[#allocation2 + $0x48] sm:$0xff] }
 0x10d   : > { %1022 = vst.msk [vmem:[#allocation2 + $0x68] sm:$0xff] %vm215_vm1, %v1006_v55  ;;  %v1005_v61 = vadd.f32 %v974_v36, %v789_v57  ;;  %1273 = vst.msk [vmem:[#allocation2] sm:$0xff] %vm215_vm1, %v1257_v56  ;;  %v1260_v62 = vadd.f32 %v1983_v59, %v1044_v58 }
 0x10e   : > { %v792_v63 = vld [vmem:[#allocation2 + $0x78] sm:$0xff]  ;;  %v1188_v1 = vpop.f32.mrf.mxu1  ;;  %v2013_v2 = vpop.f32.mrf.mxu0  ;;  %v1049_v36 = vld [vmem:[#allocation2 + $0x40] sm:$0xff] }
 0x10f   : > { %1021 = vst.msk [vmem:[#allocation2 + $0x60] sm:$0xff] %vm215_vm1, %v1005_v61  ;;  %v1008_v3 = vadd.f32 %v1971_v42, %v792_v63  ;;  %1276 = vst.msk [vmem:[#allocation2 + $0x18] sm:$0xff] %vm215_vm1, %v1260_v62  ;;  %v1259_v4 = vadd.f32 %v1188_v1, %v1043_v0 }
 0x110   : > { %v791_v5 = vld [vmem:[#allocation2 + $0x70] sm:$0xff]  ;;  %v1986_v7 = vpop.f32.mrf.mxu1  ;;  %v1452_v8 = vpop.f32.mrf.mxu0  ;;  %v1052_v43 = vld [vmem:[#allocation2 + $0x58] sm:$0xff] }
 0x111   : > { %1024 = vst.msk [vmem:[#allocation2 + $0x78] sm:$0xff] %vm215_vm1, %v1008_v3  ;;  %v1007_v9 = vadd.f32 %v984_v48, %v791_v5  ;;  %1275 = vst.msk [vmem:[#allocation2 + $0x10] sm:$0xff] %vm215_vm1, %v1259_v4  ;;  %v1262_v10 = vadd.f32 %v1986_v7, %v1046_v6 }
 0x112   : > { %v1306_v11 = vld [vmem:[#allocation2 + $0x8] sm:$0xff]  ;;  %v1198_v13 = vpop.f32.mrf.mxu1  ;;  %v2016_v14 = vpop.f32.mrf.mxu0  ;;  %v1051_v50 = vld [vmem:[#allocation2 + $0x50] sm:$0xff] }
 0x113   : > { %1023 = vst.msk [vmem:[#allocation2 + $0x70] sm:$0xff] %vm215_vm1, %v1007_v9  ;;  %1278 = vst.msk [vmem:[#allocation2 + $0x28] sm:$0xff] %vm215_vm1, %v1262_v10  ;;  %v1522_v15 = vadd.f32 %v2010_v54, %v1306_v11  ;;  %v1261_v16 = vadd.f32 %v1198_v13, %v1045_v12 }
 0x114   : > { %v1305_v17 = vld [vmem:[#allocation2] sm:$0xff]  ;;  %v1989_v19 = vpop.f32.mrf.mxu1  ;;  %v1462_v20 = vpop.f32.mrf.mxu0  ;;  %v1054_v57 = vld [vmem:[#allocation2 + $0x68] sm:$0xff] }
 0x115   : > { %1538 = vst.msk [vmem:[#allocation2 + $0x8] sm:$0xff] %vm215_vm1, %v1522_v15  ;;  %1277 = vst.msk [vmem:[#allocation2 + $0x20] sm:$0xff] %vm215_vm1, %v1261_v16  ;;  %v1521_v21 = vadd.f32 %v1442_v60, %v1305_v17  ;;  %v1264_v22 = vadd.f32 %v1989_v19, %v1048_v18 }
 0x116   : > { %v1308_v23 = vld [vmem:[#allocation2 + $0x18] sm:$0xff]  ;;  %v1208_v25 = vpop.f32.mrf.mxu1  ;;  %v2019_v26 = vpop.f32.mrf.mxu0  ;;  %v1053_v0 = vld [vmem:[#allocation2 + $0x60] sm:$0xff] }
 0x117   : > { %1537 = vst.msk [vmem:[#allocation2] sm:$0xff] %vm215_vm1, %v1521_v21  ;;  %1280 = vst.msk [vmem:[#allocation2 + $0x38] sm:$0xff] %vm215_vm1, %v1264_v22  ;;  %v1524_v27 = vadd.f32 %v2013_v2, %v1308_v23  ;;  %v1263_v28 = vadd.f32 %v1208_v25, %v1047_v24 }
 0x118   : > { %v1307_v29 = vld [vmem:[#allocation2 + $0x10] sm:$0xff]  ;;  %v1992_v31 = vpop.f32.mrf.mxu1  ;;  %v1472_v32 = vpop.f32.mrf.mxu0  ;;  %v1056_v6 = vld [vmem:[#allocation2 + $0x78] sm:$0xff] }
 0x119   : > { %1540 = vst.msk [vmem:[#allocation2 + $0x18] sm:$0xff] %vm215_vm1, %v1524_v27  ;;  %1279 = vst.msk [vmem:[#allocation2 + $0x30] sm:$0xff] %vm215_vm1, %v1263_v28  ;;  %v1523_v33 = vadd.f32 %v1452_v8, %v1307_v29  ;;  %v1266_v34 = vadd.f32 %v1992_v31, %v1050_v30 }
 0x11a   : > { %v1310_v35 = vld [vmem:[#allocation2 + $0x28] sm:$0xff]  ;;  %v1218_v37 = vpop.f32.mrf.mxu1  ;;  %v2022_v38 = vpop.f32.mrf.mxu0  ;;  %v1055_v13 = vld [vmem:[#allocation2 + $0x70] sm:$0xff] }
 0x11b   : > { %1539 = vst.msk [vmem:[#allocation2 + $0x10] sm:$0xff] %vm215_vm1, %v1523_v33  ;;  %1282 = vst.msk [vmem:[#allocation2 + $0x48] sm:$0xff] %vm215_vm1, %v1266_v34  ;;  %v1526_v39 = vadd.f32 %v2016_v14, %v1310_v35  ;;  %v1265_v40 = vadd.f32 %v1218_v37, %v1049_v36 }
 0x11c   : > { %v1554_v41 = vld [vmem:[#allocation2 + $0x8] sm:$0xff]  ;;  %v1309_v42 = vld [vmem:[#allocation2 + $0x20] sm:$0xff]  ;;  %v1995_v44 = vpop.f32.mrf.mxu1  ;;  %v1482_v45 = vpop.f32.mrf.mxu0 }
 0x11d   : > { %1570 = vst.msk [vmem:[%s2491_s24 + $0x8] sm:$0xff] %vm215_vm1, %v1554_v41  ;;  %1542 = vst.msk [vmem:[#allocation2 + $0x28] sm:$0xff] %vm215_vm1, %v1526_v39  ;;  %v1525_v46 = vadd.f32 %v1462_v20, %v1309_v42  ;;  %v1268_v47 = vadd.f32 %v1995_v44, %v1052_v43 }
 0x11e   : > { %1281 = vst.msk [vmem:[#allocation2 + $0x40] sm:$0xff] %vm215_vm1, %v1265_v40  ;;  %v1553_v48 = vld [vmem:[#allocation2] sm:$0xff]  ;;  %v1312_v49 = vld [vmem:[#allocation2 + $0x38] sm:$0xff]  ;;  %v1228_v51 = vpop.f32.mrf.mxu1  ;;  %v2025_v52 = vpop.f32.mrf.mxu0 }
 0x11f   : > { %1569 = vst.msk [vmem:[%s2491_s24] sm:$0xff] %vm215_vm1, %v1553_v48  ;;  %1541 = vst.msk [vmem:[#allocation2 + $0x20] sm:$0xff] %vm215_vm1, %v1525_v46  ;;  %v1528_v53 = vadd.f32 %v2019_v26, %v1312_v49  ;;  %v1267_v54 = vadd.f32 %v1228_v51, %v1051_v50 }
 0x120   : > { %1284 = vst.msk [vmem:[#allocation2 + $0x58] sm:$0xff] %vm215_vm1, %v1268_v47  ;;  %v1556_v55 = vld [vmem:[#allocation2 + $0x18] sm:$0xff]  ;;  %v1311_v56 = vld [vmem:[#allocation2 + $0x30] sm:$0xff]  ;;  %v1998_v58 = vpop.f32.mrf.mxu1  ;;  %v1492_v59 = vpop.f32.mrf.mxu0 }
 0x121   : > { %1572 = vst.msk [vmem:[%s2491_s24 + $0x18] sm:$0xff] %vm215_vm1, %v1556_v55  ;;  %1544 = vst.msk [vmem:[#allocation2 + $0x38] sm:$0xff] %vm215_vm1, %v1528_v53  ;;  %v1527_v60 = vadd.f32 %v1472_v32, %v1311_v56  ;;  %v1270_v61 = vadd.f32 %v1998_v58, %v1054_v57 }
 0x122   : > { %1283 = vst.msk [vmem:[#allocation2 + $0x50] sm:$0xff] %vm215_vm1, %v1267_v54  ;;  %v1555_v62 = vld [vmem:[#allocation2 + $0x10] sm:$0xff]  ;;  %v1314_v63 = vld [vmem:[#allocation2 + $0x48] sm:$0xff]  ;;  %v1238_v1 = vpop.f32.mrf.mxu1  ;;  %v2028_v8 = vpop.f32.mrf.mxu0 }
 0x123   : > { %1571 = vst.msk [vmem:[%s2491_s24 + $0x10] sm:$0xff] %vm215_vm1, %v1555_v62  ;;  %1543 = vst.msk [vmem:[#allocation2 + $0x30] sm:$0xff] %vm215_vm1, %v1527_v60  ;;  %v1530_v2 = vadd.f32 %v2022_v38, %v1314_v63  ;;  %v1269_v3 = vadd.f32 %v1238_v1, %v1053_v0 }
 0x124   : > { %1286 = vst.msk [vmem:[#allocation2 + $0x68] sm:$0xff] %vm215_vm1, %v1270_v61  ;;  %v1558_v4 = vld [vmem:[#allocation2 + $0x28] sm:$0xff]  ;;  %v2001_v7 = vpop.f32.mrf.mxu1  ;;  %v1502_v19 = vpop.f32.mrf.mxu0 }
 0x125   : > { %v1313_v5 = vld [vmem:[#allocation2 + $0x40] sm:$0xff]  ;;  %1574 = vst.msk [vmem:[%s2491_s24 + $0x28] sm:$0xff] %vm215_vm1, %v1558_v4  ;;  %1546 = vst.msk [vmem:[#allocation2 + $0x48] sm:$0xff] %vm215_vm1, %v1530_v2  ;;  %v1272_v10 = vadd.f32 %v2001_v7, %v1056_v6 }
 0x126   : > { %1285 = vst.msk [vmem:[#allocation2 + $0x60] sm:$0xff] %vm215_vm1, %v1269_v3  ;;  %v1529_v9 = vadd.f32 %v1482_v45, %v1313_v5  ;;  %v1557_v11 = vld [vmem:[#allocation2 + $0x20] sm:$0xff]  ;;  %v1248_v14 = vpop.f32.mrf.mxu1  ;;  %v2031_v26 = vpop.f32.mrf.mxu0 }
 0x127   : > { %v1316_v12 = vld [vmem:[#allocation2 + $0x58] sm:$0xff]  ;;  %1573 = vst.msk [vmem:[%s2491_s24 + $0x20] sm:$0xff] %vm215_vm1, %v1557_v11  ;;  %1288 = vst.msk [vmem:[#allocation2 + $0x78] sm:$0xff] %vm215_vm1, %v1272_v10  ;;  %v1271_v16 = vadd.f32 %v1248_v14, %v1055_v13 }
 0x128   : > { %1545 = vst.msk [vmem:[#allocation2 + $0x40] sm:$0xff] %vm215_vm1, %v1529_v9  ;;  %v1532_v15 = vadd.f32 %v2025_v52, %v1316_v12  ;;  %v1560_v17 = vld [vmem:[#allocation2 + $0x38] sm:$0xff]  ;;  %v1512_v33 = vpop.f32.mrf.mxu0 }
 0x129   : > { %v1315_v18 = vld [vmem:[#allocation2 + $0x50] sm:$0xff]  ;;  %1576 = vst.msk [vmem:[%s2491_s24 + $0x38] sm:$0xff] %vm215_vm1, %v1560_v17  ;;  %1287 = vst.msk [vmem:[#allocation2 + $0x70] sm:$0xff] %vm215_vm1, %v1271_v16 }
 0x12a   : > { %1548 = vst.msk [vmem:[#allocation2 + $0x58] sm:$0xff] %vm215_vm1, %v1532_v15  ;;  %v1531_v20 = vadd.f32 %v1492_v59, %v1315_v18  ;;  %v1559_v21 = vld [vmem:[#allocation2 + $0x30] sm:$0xff] }
 0x12b   : > { %v1318_v22 = vld [vmem:[#allocation2 + $0x68] sm:$0xff]  ;;  %1575 = vst.msk [vmem:[%s2491_s24 + $0x30] sm:$0xff] %vm215_vm1, %v1559_v21 }
 0x12c   : > { %1547 = vst.msk [vmem:[#allocation2 + $0x50] sm:$0xff] %vm215_vm1, %v1531_v20  ;;  %v1534_v23 = vadd.f32 %v2028_v8, %v1318_v22  ;;  %v1562_v24 = vld [vmem:[#allocation2 + $0x48] sm:$0xff] }
 0x12d   : > { %v1317_v25 = vld [vmem:[#allocation2 + $0x60] sm:$0xff]  ;;  %1578 = vst.msk [vmem:[%s2491_s24 + $0x48] sm:$0xff] %vm215_vm1, %v1562_v24 }
 0x12e   : > { %1550 = vst.msk [vmem:[#allocation2 + $0x68] sm:$0xff] %vm215_vm1, %v1534_v23  ;;  %v1533_v27 = vadd.f32 %v1502_v19, %v1317_v25  ;;  %v1320_v29 = vld [vmem:[#allocation2 + $0x78] sm:$0xff] }
 0x12f   : > { %v1561_v28 = vld [vmem:[#allocation2 + $0x40] sm:$0xff]  ;;  %v1536_v30 = vadd.f32 %v2031_v26, %v1320_v29 }
 0x130   : > { %1577 = vst.msk [vmem:[%s2491_s24 + $0x40] sm:$0xff] %vm215_vm1, %v1561_v28  ;;  %1549 = vst.msk [vmem:[#allocation2 + $0x60] sm:$0xff] %vm215_vm1, %v1533_v27  ;;  %v1319_v32 = vld [vmem:[#allocation2 + $0x70] sm:$0xff] }
 0x131   : > { %v1564_v31 = vld [vmem:[#allocation2 + $0x58] sm:$0xff]  ;;  %1552 = vst.msk [vmem:[#allocation2 + $0x78] sm:$0xff] %vm215_vm1, %v1536_v30  ;;  %v1535_v34 = vadd.f32 %v1512_v33, %v1319_v32 }
 0x132   : > { %1580 = vst.msk [vmem:[%s2491_s24 + $0x58] sm:$0xff] %vm215_vm1, %v1564_v31 }
 0x133   : > { %v1563_v35 = vld [vmem:[#allocation2 + $0x50] sm:$0xff]  ;;  %1551 = vst.msk [vmem:[#allocation2 + $0x70] sm:$0xff] %vm215_vm1, %v1535_v34 }
 0x134   : > { %1579 = vst.msk [vmem:[%s2491_s24 + $0x50] sm:$0xff] %vm215_vm1, %v1563_v35 }
 0x135   : > { %v1566_v36 = vld [vmem:[#allocation2 + $0x68] sm:$0xff] }
 0x136   : > { %1582 = vst.msk [vmem:[%s2491_s24 + $0x68] sm:$0xff] %vm215_vm1, %v1566_v36 }
 0x137   : > { %v1565_v37 = vld [vmem:[#allocation2 + $0x60] sm:$0xff] }
 0x138   : > { %1581 = vst.msk [vmem:[%s2491_s24 + $0x60] sm:$0xff] %vm215_vm1, %v1565_v37  ;;  %v1568_v38 = vld [vmem:[#allocation2 + $0x78] sm:$0xff] }
 0x139   : > { %1584 = vst.msk [vmem:[%s2491_s24 + $0x78] sm:$0xff] %vm215_vm1, %v1568_v38 }
 0x13a   : > { %v1567_v39 = vld [vmem:[#allocation2 + $0x70] sm:$0xff] }
 0x13b   : > { %1583 = vst.msk [vmem:[%s2491_s24 + $0x70] sm:$0xff] %vm215_vm1, %v1567_v39 }
 0x13c PF: > { %s13_s16 = sadd.s32 1, %s2118_s16   ;;  %s2566_s12 = smov %s2110_s14 }
 0x13d   : > { %p10_p8 = scmp.ge.s32.totalorder %s13_s16, 6   ;;  %s2567_s13 = smov %s2114_s15 }
 0x13e   : > { %s2568_s14 = smov %s2571_s17  ;;  %s2569_s15 = smov %s2575_s18 }
 0x13f   :  { %12 = sbr.rel (!%p10_p8) target bundleno = 3 (0x3), region = 66 }

</bundles_post_ra>
